<compile_context>
chip_gen: v7x
topology: tpu7x:2x2x1
jax: 0.10.0
libtpu: 0.0.40
codegen_flags: <defaults>
</compile_context>

<pallas_src>
import jax
import jax.numpy as jnp
from jax.experimental import pallas as pl
from jax.experimental.pallas import tpu as pltpu

LANE = 128          # TPU lane width
SUBLANE = 8         # TPU sublane width (f32)
H1, H2 = 50, 40     # true hidden sizes from the PyTorch module
H1_PAD, H2_PAD = 128, 128


def _round_up(n, m):
    return ((n + m - 1) // m) * m


def _qnet_kernel(x_ref, w1_ref, b1_ref, w2_ref, b2_ref, w3_ref, b3_ref, o_ref):
    """Whole 3-layer MLP for one batch tile; everything lives in VMEM.

    Compute dtype for the MXU operands is taken from the (pre-cast) weight
    refs; accumulation and biases are always f32.
    """
    cdt = w1_ref.dtype
    x = x_ref[...].astype(cdt)                                   # [TM, in_size]

    h1 = jnp.dot(x, w1_ref[...],
                 preferred_element_type=jnp.float32) + b1_ref[...]
    h1 = jnp.maximum(h1, 0.0)                                     # ReLU

    h2 = jnp.dot(h1.astype(cdt), w2_ref[...],
                 preferred_element_type=jnp.float32) + b2_ref[...]
    h2 = jnp.maximum(h2, 0.0)                                     # ReLU

    h3 = jnp.dot(h2.astype(cdt), w3_ref[...],
                 preferred_element_type=jnp.float32) + b3_ref[...]
    o_ref[...] = h3.astype(o_ref.dtype)                           # 128-lane dense store


def prepare_params(params, *, use_bf16=False):
    """One-time lane-padding of weights/biases, hoisted out of the forward path.

    params: dict with w1 [in,50], b1 [1,50], w2 [50,40], b2 [1,40],
            w3 [40,out], b3 [1,out]  (weights stored as [in, out]).
    Returns a dict of padded arrays plus the true in/out sizes.
    """
    wdt = jnp.bfloat16 if use_bf16 else jnp.float32
    w1, b1 = params["w1"], params["b1"]
    w2, b2 = params["w2"], params["b2"]
    w3, b3 = params["w3"], params["b3"]
    in_size = w1.shape[0]
    out_size = w3.shape[1]
    out_pad = _round_up(out_size, LANE)

    return {
        # weights: only the output (N) dims are padded to 128; the K dim of
        # layer 1 stays at the true input_size (x is not feature-padded).
        "w1": jnp.zeros((in_size, H1_PAD), wdt).at[:, :H1].set(w1.astype(wdt)),
        "b1": jnp.zeros((1, H1_PAD), jnp.float32).at[:, :H1].set(b1),
        "w2": jnp.zeros((H1_PAD, H2_PAD), wdt).at[:H1, :H2].set(w2.astype(wdt)),
        "b2": jnp.zeros((1, H2_PAD), jnp.float32).at[:, :H2].set(b2),
        "w3": jnp.zeros((H2_PAD, out_pad), wdt).at[:H2, :out_size].set(w3.astype(wdt)),
        "b3": jnp.zeros((1, out_pad), jnp.float32).at[:, :out_size].set(b3),
        "in_size": in_size,
        "out_size": out_size,
    }


def q_network_forward(x, prepped, *, block_b=512, min_grid_steps=2,
                      slice_output=True):
    """Q_network forward pass as a single Pallas TPU kernel.

    x:            [B, input_size] (or [input_size]) float32-compatible
    prepped:      output of prepare_params()
    block_b:      max batch tile (rounded up to a sublane multiple)
    min_grid_steps: cap the tile so the grid has at least this many steps
                  when B allows it (lets v7x's 2 TensorCores split the batch).
    slice_output: return [B, output_size]; set False to get the lane-padded
                  [B, out_pad] output and let downstream ops (argmax / TD
                  math) consume it without an extra HBM pass.
    """
    x = jnp.asarray(x, dtype=jnp.float32)   # mirrors torch.tensor(x, float32)
    squeeze = x.ndim == 1
    if squeeze:
        x = x[None, :]
    B, in_size = x.shape
    assert in_size == prepped["in_size"], "input feature size mismatch"
    out_size = prepped["out_size"]

    w1p, b1p = prepped["w1"], prepped["b1"]
    w2p, b2p = prepped["w2"], prepped["b2"]
    w3p, b3p = prepped["w3"], prepped["b3"]
    out_pad = w3p.shape[1]

    # ---- batch tiling (no explicit batch padding; partial last block is
    #      clipped by Pallas -- safe because the MLP is row-independent) ----
    block_b = max(_round_up(block_b, SUBLANE), SUBLANE)
    tm = min(_round_up(B, SUBLANE), block_b)
    if min_grid_steps > 1 and B > SUBLANE * (min_grid_steps - 1):
        # ensure >= min_grid_steps grid steps so multi-TC chips (v7x) can
        # shard the "parallel" batch axis across cores.
        tm = min(tm, max(_round_up(-(-B // min_grid_steps), SUBLANE), SUBLANE))
    grid = (pl.cdiv(B, tm),)

    # ---- VMEM budget: raise the scoped limit only if the double-buffered
    #      footprint could exceed the default (large input_size / big tiles).
    bytes_w = 2 if w1p.dtype == jnp.bfloat16 else 4
    vmem_est = (2 * tm * in_size * 4                    # x double buffer
                + 2 * tm * out_pad * 4                  # out double buffer
                + 2 * bytes_w * (in_size * H1_PAD + H1_PAD * H2_PAD
                                 + H2_PAD * out_pad)    # weights (worst case 2x)
                + 2 * 4 * (H1_PAD + H2_PAD + out_pad))  # biases
    cp_kwargs = {}
    if vmem_est > 12 * 1024 * 1024:
        cp_kwargs["vmem_limit_bytes"] = min(int(vmem_est * 2), 64 * 1024 * 1024)

    out_padded = pl.pallas_call(
        _qnet_kernel,
        out_shape=jax.ShapeDtypeStruct((B, out_pad), jnp.float32),
        grid=grid,
        in_specs=[
            # x: pipelined over the batch grid; last dim == full array dim.
            pl.BlockSpec((tm, in_size), lambda i: (i, 0)),
            # weights / biases: same block every step -> stay VMEM-resident.
            pl.BlockSpec((in_size, H1_PAD), lambda i: (0, 0)),
            pl.BlockSpec((1, H1_PAD), lambda i: (0, 0)),
            pl.BlockSpec((H1_PAD, H2_PAD), lambda i: (0, 0)),
            pl.BlockSpec((1, H2_PAD), lambda i: (0, 0)),
            pl.BlockSpec((H2_PAD, out_pad), lambda i: (0, 0)),
            pl.BlockSpec((1, out_pad), lambda i: (0, 0)),
        ],
        out_specs=pl.BlockSpec((tm, out_pad), lambda i: (i, 0)),
        compiler_params=pltpu.CompilerParams(
            dimension_semantics=("parallel",), **cp_kwargs),
    )(x, w1p, b1p, w2p, b2p, w3p, b3p)

    if not slice_output:
        return out_padded[0] if squeeze else out_padded
    out = out_padded[:, :out_size]
    return out[0] if squeeze else out


def init_q_network_params(key, input_size, output_size):
    """Deterministic init matching PyTorch nn.Linear default:
    U(-1/sqrt(fan_in), 1/sqrt(fan_in)) for weights and biases."""
    dims = [(input_size, 50), (50, 40), (40, output_size)]
    params = {}
    for idx, (fan_in, fan_out) in enumerate(dims, start=1):
        key, kw, kb = jax.random.split(key, 3)
        bound = 1.0 / jnp.sqrt(jnp.float32(fan_in))
        params[f"w{idx}"] = jax.random.uniform(
            kw, (fan_in, fan_out), jnp.float32, minval=-bound, maxval=bound)
        params[f"b{idx}"] = jax.random.uniform(
            kb, (1, fan_out), jnp.float32, minval=-bound, maxval=bound)
    return params


def _reference(x, params):
    h = jnp.maximum(x @ params["w1"] + params["b1"], 0.0)
    h = jnp.maximum(h @ params["w2"] + params["b2"], 0.0)
    return h @ params["w3"] + params["b3"]


if __name__ == "__main__":
    key = jax.random.PRNGKey(0)

    input_size = 8
    output_size = 4

    k_params, k_x_small, k_x_big = jax.random.split(key, 3)
    raw_params = init_q_network_params(k_params, input_size, output_size)

    # One-time parameter preparation (padding hoisted out of the forward path).
    params = prepare_params(raw_params)                   # f32 operands
    params_bf16 = prepare_params(raw_params, use_bf16=True)

    # Small per-step call (single partial tile, grid of 1).
    x_small = jax.random.normal(k_x_small, (2, input_size), dtype=jnp.float32)
    out_small = q_network_forward(x_small, params)
    jax.block_until_ready(out_small)
    ref_small = _reference(x_small, raw_params)
    assert out_small.shape == (2, output_size)
    assert jnp.allclose(out_small, ref_small, atol=1e-5, rtol=1e-5)

    # Single-observation (1-D) action-selection path.
    out_1d = q_network_forward(x_small[0], params)
    jax.block_until_ready(out_1d)
    assert out_1d.shape == (output_size,)
    assert jnp.allclose(out_1d, ref_small[0], atol=1e-5, rtol=1e-5)

    # Larger replay-buffer-style batch: exercises the multi-step batch grid
    # (>=2 steps so v7x's two TensorCores both get work) with a clipped tail.
    x_big = jax.random.normal(k_x_big, (600, input_size), dtype=jnp.float32)
    out_big = q_network_forward(x_big, params, block_b=512)
    jax.block_until_ready(out_big)
    ref_big = _reference(x_big, raw_params)
    assert out_big.shape == (600, output_size)
    assert jnp.allclose(out_big, ref_big, atol=1e-5, rtol=1e-5)

    # Optional bf16-operand path (v6e/v7x MXU-friendly); f32 accumulation,
    # looser tolerance (not a strict-correctness gate).
    out_bf16 = q_network_forward(x_big, params_bf16, block_b=512)
    jax.block_until_ready(out_bf16)
    assert jnp.allclose(out_bf16, ref_big, atol=5e-2, rtol=5e-2)

    # Padded-output path (skips the final column-slice HBM pass).
    out_pad_full = q_network_forward(x_big, params, slice_output=False)
    jax.block_until_ready(out_pad_full)
    assert jnp.allclose(out_pad_full[:, :output_size], ref_big,
                        atol=1e-5, rtol=1e-5)

    print("KERNEL_OK")
</pallas_src>

<mosaic_0001>
module attributes {stable_mosaic.version = 11 : i64} {
  func.func @_qnet_kernel(%arg0: i32, %arg1: memref<8x8xf32, #tpu.memory_space<vmem>>, %arg2: memref<8x128xf32, #tpu.memory_space<vmem>>, %arg3: memref<1x128xf32, #tpu.memory_space<vmem>>, %arg4: memref<128x128xf32, #tpu.memory_space<vmem>>, %arg5: memref<1x128xf32, #tpu.memory_space<vmem>>, %arg6: memref<128x128xf32, #tpu.memory_space<vmem>>, %arg7: memref<1x128xf32, #tpu.memory_space<vmem>>, %arg8: memref<8x128xf32, #tpu.memory_space<vmem>>) attributes {dimension_semantics = [#tpu.dimension_semantics<parallel>], iteration_bounds = array<i64: 1>, scalar_prefetch = 0 : i64, scratch_operands = 0 : i64, tpu.core_type = #tpu.core_type<tc>, window_params = [{transform_indices = @transform_0, window_bounds = array<i64: 8, 8>}, {pipeline_mode = #tpu.pipeline_mode<synchronous>, transform_indices = @transform_1, window_bounds = array<i64: 8, 128>}, {pipeline_mode = #tpu.pipeline_mode<synchronous>, transform_indices = @transform_2, window_bounds = array<i64: 1, 128>}, {pipeline_mode = #tpu.pipeline_mode<synchronous>, transform_indices = @transform_3, window_bounds = array<i64: 128, 128>}, {pipeline_mode = #tpu.pipeline_mode<synchronous>, transform_indices = @transform_4, window_bounds = array<i64: 1, 128>}, {pipeline_mode = #tpu.pipeline_mode<synchronous>, transform_indices = @transform_5, window_bounds = array<i64: 128, 128>}, {pipeline_mode = #tpu.pipeline_mode<synchronous>, transform_indices = @transform_6, window_bounds = array<i64: 1, 128>}, {transform_indices = @transform_7, window_bounds = array<i64: 8, 128>}]} {
    %c0 = arith.constant 0 : index
    %c0_0 = arith.constant 0 : index
    %0 = vector.load %arg1[%c0, %c0_0] : memref<8x8xf32, #tpu.memory_space<vmem>>, vector<8x8xf32>
    %c0_1 = arith.constant 0 : index
    %c0_2 = arith.constant 0 : index
    %1 = vector.load %arg2[%c0_1, %c0_2] : memref<8x128xf32, #tpu.memory_space<vmem>>, vector<8x128xf32>
    %cst = arith.constant dense<0.000000e+00> : vector<8x128xf32>
    %2 = tpu.matmul %0, %1, %cst {dimension_numbers = #tpu.dot_dimension_numbers<[1], [0], [0], [1], [0, 0, 1, 1], [], []>} : vector<8x8xf32>, vector<8x128xf32>, vector<8x128xf32> -> vector<8x128xf32>
    %c0_3 = arith.constant 0 : index
    %c0_4 = arith.constant 0 : index
    %3 = vector.load %arg3[%c0_3, %c0_4] : memref<1x128xf32, #tpu.memory_space<vmem>>, vector<1x128xf32>
    %4 = vector.broadcast %3 : vector<1x128xf32> to vector<8x128xf32>
    %5 = arith.addf %2, %4 : vector<8x128xf32>
    %cst_5 = arith.constant 0.000000e+00 : f32
    %6 = vector.broadcast %cst_5 : f32 to vector<8x128xf32>
    %7 = arith.maximumf %5, %6 : vector<8x128xf32>
    %c0_6 = arith.constant 0 : index
    %c0_7 = arith.constant 0 : index
    %8 = vector.load %arg4[%c0_6, %c0_7] : memref<128x128xf32, #tpu.memory_space<vmem>>, vector<128x128xf32>
    %cst_8 = arith.constant dense<0.000000e+00> : vector<8x128xf32>
    %9 = tpu.matmul %7, %8, %cst_8 {dimension_numbers = #tpu.dot_dimension_numbers<[1], [0], [0], [1], [0, 0, 1, 1], [], []>} : vector<8x128xf32>, vector<128x128xf32>, vector<8x128xf32> -> vector<8x128xf32>
    %c0_9 = arith.constant 0 : index
    %c0_10 = arith.constant 0 : index
    %10 = vector.load %arg5[%c0_9, %c0_10] : memref<1x128xf32, #tpu.memory_space<vmem>>, vector<1x128xf32>
    %11 = vector.broadcast %10 : vector<1x128xf32> to vector<8x128xf32>
    %12 = arith.addf %9, %11 : vector<8x128xf32>
    %cst_11 = arith.constant 0.000000e+00 : f32
    %13 = vector.broadcast %cst_11 : f32 to vector<8x128xf32>
    %14 = arith.maximumf %12, %13 : vector<8x128xf32>
    %c0_12 = arith.constant 0 : index
    %c0_13 = arith.constant 0 : index
    %15 = vector.load %arg6[%c0_12, %c0_13] : memref<128x128xf32, #tpu.memory_space<vmem>>, vector<128x128xf32>
    %cst_14 = arith.constant dense<0.000000e+00> : vector<8x128xf32>
    %16 = tpu.matmul %14, %15, %cst_14 {dimension_numbers = #tpu.dot_dimension_numbers<[1], [0], [0], [1], [0, 0, 1, 1], [], []>} : vector<8x128xf32>, vector<128x128xf32>, vector<8x128xf32> -> vector<8x128xf32>
    %c0_15 = arith.constant 0 : index
    %c0_16 = arith.constant 0 : index
    %17 = vector.load %arg7[%c0_15, %c0_16] : memref<1x128xf32, #tpu.memory_space<vmem>>, vector<1x128xf32>
    %18 = vector.broadcast %17 : vector<1x128xf32> to vector<8x128xf32>
    %19 = arith.addf %16, %18 : vector<8x128xf32>
    %c0_17 = arith.constant 0 : index
    %c0_18 = arith.constant 0 : index
    %20 = vector.load %arg8[%c0_17, %c0_18] : memref<8x128xf32, #tpu.memory_space<vmem>>, vector<8x128xf32>
    tpu.vector_store %arg8[%c0_17, %c0_18], %19 {strides = array<i32>} : memref<8x128xf32, #tpu.memory_space<vmem>>, vector<8x128xf32>,
    return
  }
  func.func @transform_0(%arg0: i32) -> (i32, i32) {
    %c0_i32 = arith.constant 0 : i32
    %c0_i32_0 = arith.constant 0 : i32
    return %arg0, %c0_i32 : i32, i32
  }
  func.func @transform_1(%arg0: i32) -> (i32, i32) {
    %c0_i32 = arith.constant 0 : i32
    %c0_i32_0 = arith.constant 0 : i32
    %c0_i32_1 = arith.constant 0 : i32
    return %c0_i32, %c0_i32_0 : i32, i32
  }
  func.func @transform_2(%arg0: i32) -> (i32, i32) {
    %c0_i32 = arith.constant 0 : i32
    %c0_i32_0 = arith.constant 0 : i32
    %c0_i32_1 = arith.constant 0 : i32
    return %c0_i32, %c0_i32_0 : i32, i32
  }
  func.func @transform_3(%arg0: i32) -> (i32, i32) {
    %c0_i32 = arith.constant 0 : i32
    %c0_i32_0 = arith.constant 0 : i32
    %c0_i32_1 = arith.constant 0 : i32
    return %c0_i32, %c0_i32_0 : i32, i32
  }
  func.func @transform_4(%arg0: i32) -> (i32, i32) {
    %c0_i32 = arith.constant 0 : i32
    %c0_i32_0 = arith.constant 0 : i32
    %c0_i32_1 = arith.constant 0 : i32
    return %c0_i32, %c0_i32_0 : i32, i32
  }
  func.func @transform_5(%arg0: i32) -> (i32, i32) {
    %c0_i32 = arith.constant 0 : i32
    %c0_i32_0 = arith.constant 0 : i32
    %c0_i32_1 = arith.constant 0 : i32
    return %c0_i32, %c0_i32_0 : i32, i32
  }
  func.func @transform_6(%arg0: i32) -> (i32, i32) {
    %c0_i32 = arith.constant 0 : i32
    %c0_i32_0 = arith.constant 0 : i32
    %c0_i32_1 = arith.constant 0 : i32
    return %c0_i32, %c0_i32_0 : i32, i32
  }
  func.func @transform_7(%arg0: i32) -> (i32, i32) {
    %c0_i32 = arith.constant 0 : i32
    %c0_i32_0 = arith.constant 0 : i32
    return %arg0, %c0_i32 : i32, i32
  }
}

</mosaic_0001>

<bundles_post_ra>
// kernel: tpu_custom_call.1
= control target key start
LH: loop header
LB: loop body
LE: loop exit
PB: predicated region body
PF: predicated region fallthrough
CT: control target
= control target key end

     0   :  { %12 = vsyncpa [#allocation3], 0  ;;  %s818_s0 = inlined_call_operand.hbm [shape: f32[2,8], index: 0, kind: input, shape index: {}]   ;;  %s819_s1 = inlined_call_operand.hbm [shape: f32[8,128], index: 1, kind: input, shape index: {}]   ;;  %s820_s2 = inlined_call_operand.vmem [shape: f32[1,128], index: 2, kind: input, shape index: {}]   ;;  %s821_s3 = inlined_call_operand.hbm [shape: f32[128,128], index: 3, kind: input, shape index: {}]   ;;  %s822_s4 = inlined_call_operand.vmem [shape: f32[1,128], index: 4, kind: input, shape index: {}]   ;;  %s823_s5 = inlined_call_operand.hbm [shape: f32[128,128], index: 5, kind: input, shape index: {}]   ;;  %s824_s6 = inlined_call_operand.vmem [shape: f32[1,128], index: 6, kind: input, shape index: {}]   ;;  %s825_s7 = inlined_call_operand.hbm [shape: f32[2,128], index: 7, kind: output, shape index: {}]  }
   0x1   :  { %13 = vsyncpa [#allocation6], 0 }
   0x2   :  { %14 = vsyncpa [#allocation9], 0 }
   0x3   :  { %15 = vsyncpa [#allocation4], 0 }
   0x4   :  { %20 = vsyncadd [#allocation3], 96  ;;  %s664_s24 = smov [#allocation5]   ;;  %s665_s26 = smov [#allocation2]  }
   0x5   :  { %s34_s25 = sshll.u32 %s664_s24, 4  ;;  %s21_s27 = sshll.u32 %s665_s26, 4  ;;  %s35_s25 = int_to_ptr.vmem [resolvable:$true] %s34_s25  ;;  %s716_s27 = int_to_ptr.vmem [resolvable:$true] %s21_s27 }
   0x6   :  { %s546_s30 = scalar_lea.hbm %s819_s1, 128 }
   0x7   :  { %p547_p0 = scmp.ne.s32.totalorder %s819_s1, %s546_s30  ;;  %p550_p1 = scmp.lt.u32.totalorder %s546_s30, %s819_s1 }
   0x9   :  { %p552_p2 = pnand %p550_p1, %p547_p0 }
   0xb   :  { %555 = shalt.err (!%p552_p2)
}
   0xc   :  { %s556_s12 = scalar_lea.vmem %s35_s25, 128  ;;  %p561_p4 = scmp.lt.s32.totalorder %s35_s25, %s35_s25 }
   0xd   :  { %p557_p3 = scmp.ne.s32.totalorder %s35_s25, %s556_s12  ;;  %p562_p5 = scmp.lt.s32.totalorder %s556_s12, %s556_s12 }
   0xf   :  { %p563_p6 = por %p562_p5, %p561_p4 }
  0x11   :  { %p564_p7 = pnand %p563_p6, %p557_p3 }
  0x13   :  { %567 = shalt.err (!%p564_p7)
}
  0x14   :  { %37 = dma.hbm_to_vmem [thread:$0]  %s819_s1, 128, %s35_s25, [#allocation6]  }
  0x15   :  { %s568_s17 = scalar_lea.hbm %s818_s0, 32 }
  0x16   :  { %p569_p8 = scmp.ne.s32.totalorder %s818_s0, %s568_s17  ;;  %p572_p9 = scmp.lt.u32.totalorder %s568_s17, %s818_s0 }
  0x18   :  { %p574_p10 = pnand %p572_p9, %p569_p8 }
  0x1a   :  { %577 = shalt.err (!%p574_p10)
}
  0x1b   :  { %s578_s22 = scalar_lea.vmem %s716_s27, 32  ;;  %s582_s1 = scalar_lea.vmem %s716_s27, 128 }
  0x1c   :  { %p579_p11 = scmp.ne.s32.totalorder %s716_s27, %s578_s22  ;;  %p583_p12 = scmp.lt.s32.totalorder %s716_s27, %s716_s27 }
  0x1d   :  { %p584_p13 = scmp.lt.s32.totalorder %s582_s1, %s578_s22 }
  0x1f   :  { %p585_p0 = por %p584_p13, %p583_p12 }
  0x21   :  { %p586_p1 = pnand %p585_p0, %p579_p11 }
  0x23   :  { %589 = shalt.err (!%p586_p1)
}
  0x24   :  { %s666_s23 = smov 32   ;;  %s667_s24 = smov 2  }
  0x25   :  { %27 = dma.hbm_to_vmem [thread:$0]  %s818_s0, 32, %s716_s27, [#allocation3], %s666_s23, %s666_s23, %s667_s24  }
  0x26   :  { %s668_s28 = smov [#allocation7]   ;;  %s590_s9 = scalar_lea.hbm %s821_s3, 2048 }
  0x27   :  { %s45_s29 = sshll.u32 %s668_s28, 4  ;;  %p591_p2 = scmp.ne.s32.totalorder %s821_s3, %s590_s9  ;;  %s46_s29 = int_to_ptr.vmem [resolvable:$true] %s45_s29 }
  0x28   :  { %p594_p3 = scmp.lt.u32.totalorder %s590_s9, %s821_s3 }
  0x2a   :  { %p596_p4 = pnand %p594_p3, %p591_p2 }
  0x2c   :  { %599 = shalt.err (!%p596_p4)
}
  0x2d   :  { %s600_s14 = scalar_lea.vmem %s46_s29, 2048  ;;  %p605_p6 = scmp.lt.s32.totalorder %s46_s29, %s46_s29 }
  0x2e   :  { %p601_p5 = scmp.ne.s32.totalorder %s46_s29, %s600_s14  ;;  %p606_p7 = scmp.lt.s32.totalorder %s600_s14, %s600_s14 }
  0x30   :  { %p607_p8 = por %p606_p7, %p605_p6 }
  0x32   :  { %p608_p9 = pnand %p607_p8, %p601_p5 }
  0x34   :  { %611 = shalt.err (!%p608_p9)
}
  0x35   :  { %s669_s0 = smov 128   ;;  %s670_s27 = smov 8  }
  0x36   :  { %51 = dma.hbm_to_vmem [thread:$0]  %s821_s3, 2048, %s46_s29, [#allocation6], %s669_s0, %s669_s0, %s670_s27  }
  0x37   :  { %s671_s17 = smov [#allocation8]   ;;  %s612_s21 = scalar_lea.hbm %s823_s5, 2048 }
  0x38   :  { %s59_s18 = sshll.u32 %s671_s17, 4  ;;  %p613_p10 = scmp.ne.s32.totalorder %s823_s5, %s612_s21  ;;  %s60_s18 = int_to_ptr.vmem [resolvable:$true] %s59_s18 }
  0x39   :  { %p616_p11 = scmp.lt.u32.totalorder %s612_s21, %s823_s5 }
  0x3b   :  { %p618_p12 = pnand %p616_p11, %p613_p10 }
  0x3d   :  { %621 = shalt.err (!%p618_p12)
}
  0x3e   :  { %s622_s28 = scalar_lea.vmem %s60_s18, 2048  ;;  %p627_p0 = scmp.lt.s32.totalorder %s60_s18, %s60_s18 }
  0x3f   :  { %p623_p13 = scmp.ne.s32.totalorder %s60_s18, %s622_s28  ;;  %p628_p1 = scmp.lt.s32.totalorder %s622_s28, %s622_s28 }
  0x41   :  { %p629_p2 = por %p628_p1, %p627_p0 }
  0x43   :  { %p630_p3 = pnand %p629_p2, %p623_p13 }
  0x45   :  { %633 = shalt.err (!%p630_p3)
}
  0x46   :  { %65 = dma.hbm_to_vmem [thread:$0]  %s823_s5, 2048, %s60_s18, [#allocation9], %s669_s0, %s669_s0, %s670_s27  }
  0x47   :  { %656 = dma.done.wait [#allocation3], 128  }
  0x48   :  { %657 = vsyncadd [#allocation3], 4294967168 }
  0x49   :  { %658 = dma.done.wait [#allocation6], 2176  }
  0x4a   :  { %659 = vsyncadd [#allocation6], 4294965120 }
  0x4b   :  { %660 = dma.done.wait [#allocation9], 2048  }
  0x4c   :  { %661 = vsyncadd [#allocation9], 4294965248  ;;  %v672_v0 = vmov 0.0   ;;  %vm673_vm0 = vmmov 0   ;;  %v674_v1 = vmov 0.0|0.0   ;;  %vm89_vm1 = vcmask 64512  }
  0x4d   :  { %411 = vmatprep.subr.mxu0 %v672_v0  ;;  %413 = vmatprep.mubr.msk.f32.mxu0 %vm673_vm0, %v672_v0  ;;  %v81_v2 = vld [vmem:[#allocation5] sm:$0xff]  ;;  %v80_v3 = vld [vmem:[#allocation2] sm:$0xff]  ;;  %v164_v4 = vld [vmem:[#allocation7] sm:$0xff] }
  0x4e   :  { %486 = vmatprep.subr.bf16.mxu1 %v674_v1  ;;  %448 = vmatprep.mubr.msk.f32.mxu1 %vm673_vm0, %v672_v0  ;;  %v165_v5 = vld [vmem:[#allocation7 + $0x8] sm:$0xff]  ;;  %v166_v6 = vld [vmem:[#allocation7 + $0x10] sm:$0xff]  ;;  %v167_v7 = vld [vmem:[#allocation7 + $0x18] sm:$0xff] }
  0x4f   :  { %412 = vmatpush3.msra.mxu0 %v81_v2  ;;  %v487_v8 = vpack.c.bf16 %v165_v5, %v164_v4  ;;  %v490_v9 = vpack.c.bf16 %v167_v7, %v166_v6  ;;  %v168_v10 = vld [vmem:[#allocation7 + $0x20] sm:$0xff]  ;;  %v169_v11 = vld [vmem:[#allocation7 + $0x28] sm:$0xff]  ;;  %v170_v13 = vld [vmem:[#allocation7 + $0x30] sm:$0xff] }
  0x50   :  { %414 = vmatmul.mubr.msk.f32.vlgmr.msra.gmra.mrb[0].mxu0 %vm89_vm1, %v80_v3  ;;  %510 = vmatprep.subr.bf16.mxu0 %v674_v1  ;;  %v493_v12 = vpack.c.bf16 %v169_v11, %v168_v10  ;;  %v171_v14 = vld [vmem:[#allocation7 + $0x38] sm:$0xff]  ;;  %v172_v16 = vld [vmem:[#allocation7 + $0x40] sm:$0xff]  ;;  %v173_v17 = vld [vmem:[#allocation7 + $0x48] sm:$0xff] }
  0x51   :  { %483 = vmatprep.mubr.msk.f32.mxu0 %vm673_vm0, %v672_v0  ;;  %488 = vmatpush3.bf16.msra.mxu1 %v487_v8  ;;  %v496_v15 = vpack.c.bf16 %v171_v14, %v170_v13  ;;  %v499_v18 = vpack.c.bf16 %v173_v17, %v172_v16  ;;  %v174_v19 = vld [vmem:[#allocation7 + $0x50] sm:$0xff]  ;;  %v175_v20 = vld [vmem:[#allocation7 + $0x58] sm:$0xff]  ;;  %v176_v22 = vld [vmem:[#allocation7 + $0x60] sm:$0xff] }
  0x52   :  { %489 = vmatprep.subr.bf16.mxu1 %v674_v1  ;;  %v502_v21 = vpack.c.bf16 %v175_v20, %v174_v19  ;;  %v177_v23 = vld [vmem:[#allocation7 + $0x68] sm:$0xff]  ;;  %v178_v25 = vld [vmem:[#allocation7 + $0x70] sm:$0xff]  ;;  %v179_v26 = vld [vmem:[#allocation7 + $0x78] sm:$0xff] }
  0x53   :  { %v505_v24 = vpack.c.bf16 %v177_v23, %v176_v22  ;;  %v508_v27 = vpack.c.bf16 %v179_v26, %v178_v25  ;;  %v258_v28 = vld [vmem:[#allocation8] sm:$0xff]  ;;  %v259_v29 = vld [vmem:[#allocation8 + $0x8] sm:$0xff]  ;;  %v260_v30 = vld [vmem:[#allocation8 + $0x10] sm:$0xff] }
  0x54   :  { %v511_v31 = vpack.c.bf16 %v259_v29, %v258_v28  ;;  %v261_v32 = vld [vmem:[#allocation8 + $0x18] sm:$0xff]  ;;  %v262_v34 = vld [vmem:[#allocation8 + $0x20] sm:$0xff]  ;;  %v263_v35 = vld [vmem:[#allocation8 + $0x28] sm:$0xff] }
  0x55   :  { %491 = vmatpush3.bf16.msra.mxu1 %v490_v9  ;;  %v514_v33 = vpack.c.bf16 %v261_v32, %v260_v30  ;;  %v517_v36 = vpack.c.bf16 %v263_v35, %v262_v34  ;;  %v264_v37 = vld [vmem:[#allocation8 + $0x30] sm:$0xff]  ;;  %v265_v38 = vld [vmem:[#allocation8 + $0x38] sm:$0xff]  ;;  %v266_v40 = vld [vmem:[#allocation8 + $0x40] sm:$0xff] }
  0x56   :  { %492 = vmatprep.subr.bf16.mxu1 %v674_v1  ;;  %512 = vmatpush3.bf16.msra.mxu0 %v511_v31  ;;  %v520_v39 = vpack.c.bf16 %v265_v38, %v264_v37  ;;  %v267_v41 = vld [vmem:[#allocation8 + $0x48] sm:$0xff]  ;;  %v268_v43 = vld [vmem:[#allocation8 + $0x50] sm:$0xff]  ;;  %v269_v44 = vld [vmem:[#allocation8 + $0x58] sm:$0xff] }
  0x57   :  { %513 = vmatprep.subr.bf16.mxu0 %v674_v1  ;;  %v523_v42 = vpack.c.bf16 %v267_v41, %v266_v40  ;;  %v526_v45 = vpack.c.bf16 %v269_v44, %v268_v43  ;;  %v270_v46 = vld [vmem:[#allocation8 + $0x60] sm:$0xff]  ;;  %v271_v47 = vld [vmem:[#allocation8 + $0x68] sm:$0xff]  ;;  %v371_v49 = vld [vmem:[%s820_s2] ss:$0 sm:$0xff] }
  0x58   :  { %v529_v48 = vpack.c.bf16 %v271_v47, %v270_v46  ;;  %v272_v54 = vld [vmem:[#allocation8 + $0x70] sm:$0xff]  ;;  %v273_v55 = vld [vmem:[#allocation8 + $0x78] sm:$0xff] }
  0x59   :  { %494 = vmatpush3.bf16.msra.mxu1 %v493_v12  ;;  %v532_v56 = vpack.c.bf16 %v273_v55, %v272_v54  ;;  %v373_v57 = vld [vmem:[%s822_s4] ss:$0 sm:$0xff] }
  0x5a   :  { %495 = vmatprep.subr.bf16.mxu1 %v674_v1  ;;  %515 = vmatpush3.bf16.msra.mxu0 %v514_v33  ;;  %v374_v62 = vld [vmem:[%s824_s6] ss:$0 sm:$0xff] }
  0x5b   :  { %516 = vmatprep.subr.bf16.mxu0 %v674_v1 }
  0x5d   :  { %497 = vmatpush3.bf16.msra.mxu1 %v496_v15 }
  0x5e   :  { %498 = vmatprep.subr.bf16.mxu1 %v674_v1  ;;  %518 = vmatpush3.bf16.msra.mxu0 %v517_v36 }
  0x5f   :  { %519 = vmatprep.subr.bf16.mxu0 %v674_v1 }
  0x61   :  { %500 = vmatpush3.bf16.msra.mxu1 %v499_v18 }
  0x62   :  { %501 = vmatprep.subr.bf16.mxu1 %v674_v1  ;;  %521 = vmatpush3.bf16.msra.mxu0 %v520_v39 }
  0x63   :  { %522 = vmatprep.subr.bf16.mxu0 %v674_v1 }
  0x65   :  { %503 = vmatpush3.bf16.msra.mxu1 %v502_v21 }
  0x66   :  { %504 = vmatprep.subr.bf16.mxu1 %v674_v1  ;;  %524 = vmatpush3.bf16.msra.mxu0 %v523_v42 }
  0x67   :  { %525 = vmatprep.subr.bf16.mxu0 %v674_v1 }
  0x69   :  { %506 = vmatpush3.bf16.msra.mxu1 %v505_v24 }
  0x6a   :  { %507 = vmatprep.subr.bf16.mxu1 %v674_v1  ;;  %527 = vmatpush3.bf16.msra.mxu0 %v526_v45 }
  0x6b   :  { %528 = vmatprep.subr.bf16.mxu0 %v674_v1 }
  0x6d   :  { %509 = vmatpush3.bf16.msra.mxu1 %v508_v27 }
  0x6e   :  { %530 = vmatpush3.bf16.msra.mxu0 %v529_v48 }
  0x6f   :  { %531 = vmatprep.subr.bf16.mxu0 %v674_v1 }
  0x72   :  { %533 = vmatpush3.bf16.msra.mxu0 %v532_v56 }
 0x123   :  { %v159_v50 = vpop.f32.mrb[0].mxu0 }
 0x124   :  { %v160_v51 = vadd.f32 %v371_v49, %v159_v50  ;;  %v415_v52 = vpop.f32.mrb[1].mxu0 }
 0x126   :  { %v163_v53 = vmax.f32 %v160_v51, 0.0 }
 0x128   :  { %449 = vmatmul.mubr.f32.vlgmr.msra.gmra.mrb[0].mxu1 %v163_v53 }
 0x1fb   :  { %v253_v58 = vpop.f32.mrb[0].mxu1 }
 0x1fc   :  { %v254_v59 = vadd.f32 %v373_v57, %v253_v58  ;;  %v450_v60 = vpop.f32.mrb[1].mxu1 }
 0x1fe   :  { %v257_v61 = vmax.f32 %v254_v59, 0.0 }
 0x200   :  { %484 = vmatmul.mubr.f32.vlgmr.msra.gmra.mrb[2].mxu0 %v257_v61 }
 0x2d3   :  { %v347_v63 = vpop.f32.mrb[2].mxu0 }
 0x2d4   :  { %v348_v0 = vadd.f32 %v374_v62, %v347_v63  ;;  %v485_v1 = vpop.f32.mrb[3].mxu0 }
 0x2d6   :  { %351 = vst [vmem:[#allocation10] sm:$0xff] %v348_v0 }
 0x2d7   :  { %356 = vsyncadd [#allocation4], 96  ;;  %s675_s11 = smov [#allocation10]  }
 0x2d8   :  { %s357_s12 = sshll.u32 %s675_s11, 4  ;;  %s358_s12 = int_to_ptr.vmem [resolvable:$true] %s357_s12 }
 0x2d9   :  { %s634_s13 = scalar_lea.vmem %s358_s12, 32  ;;  %s638_s4 = scalar_lea.vmem %s358_s12, 128 }
 0x2da   :  { %p635_p4 = scmp.ne.s32.totalorder %s358_s12, %s634_s13  ;;  %p639_p5 = scmp.lt.s32.totalorder %s358_s12, %s358_s12 }
 0x2db   :  { %p640_p6 = scmp.lt.s32.totalorder %s638_s4, %s634_s13 }
 0x2dd   :  { %p641_p7 = por %p640_p6, %p639_p5 }
 0x2df   :  { %p642_p8 = pnand %p641_p7, %p635_p4 }
 0x2e1   :  { %645 = shalt.err (!%p642_p8)
}
 0x2e2   :  { %s646_s6 = scalar_lea.hbm %s825_s7, 32 }
 0x2e3   :  { %p647_p9 = scmp.ne.s32.totalorder %s825_s7, %s646_s6  ;;  %p650_p10 = scmp.lt.u32.totalorder %s646_s6, %s825_s7 }
 0x2e5   :  { %p652_p11 = pnand %p650_p10, %p647_p9 }
 0x2e7   :  { %655 = shalt.err (!%p652_p11)
}
 0x2e8   :  { %363 = dma.vmem_to_hbm [thread:$0]  %s358_s12, 32, %s825_s7, [#allocation4], %s666_s23, %s666_s23, %s667_s24  }
 0x2e9   :  { %662 = dma.done.wait [#allocation4], 128  }
 0x2ea   :  { %663 = vsyncadd [#allocation4], 4294967168 }
 0x2eb   :  { %367 = vsyncpa [#allocation3], 1 }
 0x2ec   :  { %368 = vsyncpa [#allocation6], 1 }
 0x2ed   :  { %369 = vsyncpa [#allocation9], 1 }
 0x2ee   :  { %370 = vsyncpa [#allocation4], 1 }

</bundles_post_ra>
